<compile_context>
chip_gen: v7x
topology: tpu7x:2x2x1
jax: 0.10.0
libtpu: 0.0.40
codegen_flags: <defaults>
</compile_context>

<pallas_src>
import jax
import jax.numpy as jnp
from jax import lax
from jax.experimental import pallas as pl
from jax.experimental.pallas import tpu as pltpu


def _make_kernel(emit_attn, mxu_dtype):
    """Build the fused attention+residual kernel.

    emit_attn=False -> kernel signature (x, wqkv, wo, y)
    emit_attn=True  -> kernel signature (x, wqkv, wo, y, attn)
    """

    def kernel(x_ref, wqkv_ref, wo_ref, *out_refs):
        Bt, S, D = x_ref.shape                     # (Bt, S, D) batch block

        x = x_ref[...]
        x_f32 = x.astype(jnp.float32)
        # Flatten the batch block so the projection matmul sees M = Bt*S rows.
        x2d = x.reshape(Bt * S, D).astype(mxu_dtype)

        wqkv = wqkv_ref[...].astype(mxu_dtype)     # (D, 3D) fused Wq|Wk|Wv
        wo = wo_ref[...].astype(mxu_dtype)         # (D, D)

        # Fused QKV projection: one MXU push with N = 3D.
        qkv = jnp.dot(x2d, wqkv, preferred_element_type=jnp.float32)  # (Bt*S, 3D)
        q = qkv[:, 0 * D:1 * D].reshape(Bt, S, D)
        k = qkv[:, 1 * D:2 * D].reshape(Bt, S, D)
        v = qkv[:, 2 * D:3 * D].reshape(Bt, S, D)

        scale = jnp.float32(1.0) / jnp.sqrt(jnp.float32(D))
        # Contract over D directly (batched), no explicit k.T transpose.
        scores = lax.dot_general(
            q, k,
            dimension_numbers=(((2,), (2,)), ((0,), (0,))),
            preferred_element_type=jnp.float32) * scale          # (Bt, S, S)

        # Numerically stable softmax over the last axis.
        m = jnp.max(scores, axis=-1, keepdims=True)
        e = jnp.exp(scores - m)
        denom = jnp.sum(e, axis=-1, keepdims=True)
        attn = e * pl.reciprocal(denom, approx=True)             # (Bt, S, S)

        # attention-weighted values: (Bt,S,S) @ (Bt,S,D) -> (Bt,S,D)
        ctx = lax.dot_general(
            attn.astype(mxu_dtype), v.astype(mxu_dtype),
            dimension_numbers=(((2,), (1,)), ((0,), (0,))),
            preferred_element_type=jnp.float32)

        # Output projection, flattened again over Bt*S rows.
        module_out = jnp.dot(
            ctx.reshape(Bt * S, D).astype(mxu_dtype), wo,
            preferred_element_type=jnp.float32).reshape(Bt, S, D)

        # Residual add — the Residual_For_Attention forward.
        y_ref = out_refs[0]
        y_ref[...] = (x_f32 + module_out).astype(y_ref.dtype)

        if emit_attn:
            attn_ref = out_refs[1]
            attn_ref[...] = attn.astype(attn_ref.dtype)

    return kernel


def residual_for_attention(x, wq, wk, wv, wo, prediction_mode=False,
                           batch_block=None, mxu_dtype=jnp.float32):
    """Pallas implementation of Residual_For_Attention.forward.

    x: (B, S, D). Weights: (D, D) each.
    prediction_mode=False -> returns x + module_out         (no attn writeback)
    prediction_mode=True  -> returns (x + module_out, attn)
    mxu_dtype: operand dtype fed to the MXU (f32 accumulation). Use
               jnp.bfloat16 on v6e/v7x for ~2x MXU throughput.
    """
    B, S, D = x.shape

    if batch_block is None:
        batch_block = B          # small shapes: whole batch in one grid step
    assert B % batch_block == 0, "batch_block must divide B"
    Bt = batch_block

    # Fuse Wq|Wk|Wv into one (D, 3D) weight so the kernel does one wide matmul.
    wqkv = jnp.concatenate([wq, wk, wv], axis=1)

    kernel = _make_kernel(prediction_mode, mxu_dtype)

    out_shapes = [jax.ShapeDtypeStruct((B, S, D), x.dtype)]
    out_specs = [pl.BlockSpec((Bt, S, D), lambda b: (b, 0, 0))]
    if prediction_mode:
        out_shapes.append(jax.ShapeDtypeStruct((B, S, S), jnp.float32))
        out_specs.append(pl.BlockSpec((Bt, S, S), lambda b: (b, 0, 0)))

    result = pl.pallas_call(
        kernel,
        out_shape=tuple(out_shapes),
        grid_spec=pltpu.PrefetchScalarGridSpec(
            num_scalar_prefetch=0,
            grid=(B // Bt,),
            in_specs=[
                pl.BlockSpec((Bt, S, D), lambda b: (b, 0, 0)),   # x batch block
                pl.BlockSpec((D, 3 * D), lambda b: (0, 0)),      # fused Wqkv
                pl.BlockSpec((D, D), lambda b: (0, 0)),          # Wo
            ],
            out_specs=out_specs,
        ),
        compiler_params=pltpu.CompilerParams(
            dimension_semantics=("parallel",),
            vmem_limit_bytes=64 * 1024 * 1024),   # within v7x's 64 MiB VMEM
    )(x, wqkv, wo)

    if prediction_mode:
        y, attn = result
        return y, attn
    (y,) = result
    return y


def _reference(x, wq, wk, wv, wo):
    q = x @ wq
    k = x @ wk
    v = x @ wv
    scale = 1.0 / jnp.sqrt(jnp.float32(x.shape[-1]))
    scores = jnp.einsum("bsd,btd->bst", q, k) * scale
    attn = jax.nn.softmax(scores, axis=-1)
    out = jnp.einsum("bst,btd->bsd", attn, v) @ wo
    return x + out, attn


if __name__ == "__main__":
    B, S, D = 2, 8, 32
    key = jax.random.PRNGKey(0)
    kx, kq, kk, kv, ko = jax.random.split(key, 5)

    x = jax.random.normal(kx, (B, S, D), dtype=jnp.float32)
    wq = jax.random.normal(kq, (D, D), dtype=jnp.float32) * 0.1
    wk = jax.random.normal(kk, (D, D), dtype=jnp.float32) * 0.1
    wv = jax.random.normal(kv, (D, D), dtype=jnp.float32) * 0.1
    wo = jax.random.normal(ko, (D, D), dtype=jnp.float32) * 0.1

    y_ref, attn_ref = _reference(x, wq, wk, wv, wo)

    # prediction_mode=False path (no attn output is written at all).
    y = residual_for_attention(x, wq, wk, wv, wo, prediction_mode=False)
    y = jax.block_until_ready(y)

    # prediction_mode=True path (returns the attention matrix too).
    y2, attn = residual_for_attention(x, wq, wk, wv, wo, prediction_mode=True)
    y2 = jax.block_until_ready(y2)
    attn = jax.block_until_ready(attn)

    assert jnp.allclose(y, y_ref, atol=2e-3, rtol=2e-3)
    assert jnp.allclose(y2, y_ref, atol=2e-3, rtol=2e-3)
    assert jnp.allclose(attn, attn_ref, atol=2e-3, rtol=2e-3)

    # bf16 MXU-operand variant (the v6e/v7x fast path); looser tolerance.
    y_bf16 = residual_for_attention(x, wq, wk, wv, wo, prediction_mode=False,
                                    mxu_dtype=jnp.bfloat16)
    y_bf16 = jax.block_until_ready(y_bf16)
    assert jnp.allclose(y_bf16, y_ref, atol=5e-2, rtol=5e-2)

    print("KERNEL_OK")
</pallas_src>

<mosaic_0001>
module attributes {stable_mosaic.version = 11 : i64} {
  func.func @kernel(%arg0: i32, %arg1: memref<2x8x32xf32, #tpu.memory_space<vmem>>, %arg2: memref<32x96xf32, #tpu.memory_space<vmem>>, %arg3: memref<32x32xf32, #tpu.memory_space<vmem>>, %arg4: memref<2x8x32xf32, #tpu.memory_space<vmem>>) attributes {dimension_semantics = [#tpu.dimension_semantics<parallel>], iteration_bounds = array<i64: 1>, scalar_prefetch = 0 : i64, scratch_operands = 0 : i64, tpu.core_type = #tpu.core_type<tc>, window_params = [{transform_indices = @transform_0, window_bounds = array<i64: 2, 8, 32>}, {pipeline_mode = #tpu.pipeline_mode<synchronous>, transform_indices = @transform_1, window_bounds = array<i64: 32, 96>}, {pipeline_mode = #tpu.pipeline_mode<synchronous>, transform_indices = @transform_2, window_bounds = array<i64: 32, 32>}, {transform_indices = @transform_3, window_bounds = array<i64: 2, 8, 32>}]} {
    %c0 = arith.constant 0 : index
    %c0_0 = arith.constant 0 : index
    %c0_1 = arith.constant 0 : index
    %0 = vector.load %arg1[%c0, %c0_0, %c0_1] : memref<2x8x32xf32, #tpu.memory_space<vmem>>, vector<2x8x32xf32>
    %1 = vector.shape_cast %0 : vector<2x8x32xf32> to vector<16x32xf32>
    %c0_2 = arith.constant 0 : index
    %c0_3 = arith.constant 0 : index
    %2 = vector.load %arg2[%c0_2, %c0_3] : memref<32x96xf32, #tpu.memory_space<vmem>>, vector<32x96xf32>
    %c0_4 = arith.constant 0 : index
    %c0_5 = arith.constant 0 : index
    %3 = vector.load %arg3[%c0_4, %c0_5] : memref<32x32xf32, #tpu.memory_space<vmem>>, vector<32x32xf32>
    %cst = arith.constant dense<0.000000e+00> : vector<16x96xf32>
    %4 = tpu.matmul %1, %2, %cst {dimension_numbers = #tpu.dot_dimension_numbers<[1], [0], [0], [1], [0, 0, 1, 1], [], []>} : vector<16x32xf32>, vector<32x96xf32>, vector<16x96xf32> -> vector<16x96xf32>
    %5 = vector.extract_strided_slice %4 {offsets = [0, 0], sizes = [16, 32], strides = [1, 1]} : vector<16x96xf32> to vector<16x32xf32>
    %6 = vector.shape_cast %5 : vector<16x32xf32> to vector<2x8x32xf32>
    %7 = vector.extract_strided_slice %4 {offsets = [0, 32], sizes = [16, 32], strides = [1, 1]} : vector<16x96xf32> to vector<16x32xf32>
    %8 = vector.shape_cast %7 : vector<16x32xf32> to vector<2x8x32xf32>
    %9 = vector.extract_strided_slice %4 {offsets = [0, 64], sizes = [16, 32], strides = [1, 1]} : vector<16x96xf32> to vector<16x32xf32>
    %10 = vector.shape_cast %9 : vector<16x32xf32> to vector<2x8x32xf32>
    %cst_6 = arith.constant 3.200000e+01 : f32
    %11 = math.sqrt %cst_6 : f32
    %cst_7 = arith.constant 1.000000e+00 : f32
    %12 = arith.divf %cst_7, %11 : f32
    %cst_8 = arith.constant dense<0.000000e+00> : vector<2x8x8xf32>
    %13 = tpu.matmul %6, %8, %cst_8 {dimension_numbers = #tpu.dot_dimension_numbers<[2], [2], [1], [1], [0, 0, 0, 1, 1, 1], [0], [0]>} : vector<2x8x32xf32>, vector<2x8x32xf32>, vector<2x8x8xf32> -> vector<2x8x8xf32>
    %14 = vector.broadcast %12 : f32 to vector<2x8x8xf32>
    %15 = arith.mulf %13, %14 : vector<2x8x8xf32>
    %cst_9 = arith.constant dense<0xFF800000> : vector<2x8xf32>
    %16 = vector.multi_reduction <maximumf>, %15, %cst_9 [2] : vector<2x8x8xf32> to vector<2x8xf32>
    %17 = vector.shape_cast %16 : vector<2x8xf32> to vector<2x8x1xf32>
    %18 = vector.broadcast %17 : vector<2x8x1xf32> to vector<2x8x8xf32>
    %19 = arith.subf %15, %18 : vector<2x8x8xf32>
    %20 = math.exp %19 : vector<2x8x8xf32>
    %cst_10 = arith.constant dense<0.000000e+00> : vector<2x8xf32>
    %21 = vector.multi_reduction <add>, %20, %cst_10 [2] : vector<2x8x8xf32> to vector<2x8xf32>
    %22 = vector.shape_cast %21 : vector<2x8xf32> to vector<2x8x1xf32>
    %23 = tpu.reciprocal %22 {approx = true} : vector<2x8x1xf32> -> vector<2x8x1xf32>
    %24 = vector.broadcast %23 : vector<2x8x1xf32> to vector<2x8x8xf32>
    %25 = arith.mulf %20, %24 : vector<2x8x8xf32>
    %cst_11 = arith.constant dense<0.000000e+00> : vector<2x8x32xf32>
    %26 = tpu.matmul %25, %10, %cst_11 {dimension_numbers = #tpu.dot_dimension_numbers<[2], [1], [1], [2], [0, 0, 0, 1, 1, 2], [0], [0]>} : vector<2x8x8xf32>, vector<2x8x32xf32>, vector<2x8x32xf32> -> vector<2x8x32xf32>
    %27 = vector.shape_cast %26 : vector<2x8x32xf32> to vector<16x32xf32>
    %cst_12 = arith.constant dense<0.000000e+00> : vector<16x32xf32>
    %28 = tpu.matmul %27, %3, %cst_12 {dimension_numbers = #tpu.dot_dimension_numbers<[1], [0], [0], [1], [0, 0, 1, 1], [], []>} : vector<16x32xf32>, vector<32x32xf32>, vector<16x32xf32> -> vector<16x32xf32>
    %29 = vector.shape_cast %28 : vector<16x32xf32> to vector<2x8x32xf32>
    %30 = arith.addf %0, %29 : vector<2x8x32xf32>
    %c0_13 = arith.constant 0 : index
    %c0_14 = arith.constant 0 : index
    %c0_15 = arith.constant 0 : index
    %31 = vector.load %arg4[%c0_13, %c0_14, %c0_15] : memref<2x8x32xf32, #tpu.memory_space<vmem>>, vector<2x8x32xf32>
    tpu.vector_store %arg4[%c0_13, %c0_14, %c0_15], %30 {strides = array<i32>} : memref<2x8x32xf32, #tpu.memory_space<vmem>>, vector<2x8x32xf32>,
    return
  }
  func.func @transform_0(%arg0: i32) -> (i32, i32, i32) {
    %c0_i32 = arith.constant 0 : i32
    %c0_i32_0 = arith.constant 0 : i32
    %c0_i32_1 = arith.constant 0 : i32
    return %arg0, %c0_i32, %c0_i32_0 : i32, i32, i32
  }
  func.func @transform_1(%arg0: i32) -> (i32, i32) {
    %c0_i32 = arith.constant 0 : i32
    %c0_i32_0 = arith.constant 0 : i32
    %c0_i32_1 = arith.constant 0 : i32
    return %c0_i32, %c0_i32_0 : i32, i32
  }
  func.func @transform_2(%arg0: i32) -> (i32, i32) {
    %c0_i32 = arith.constant 0 : i32
    %c0_i32_0 = arith.constant 0 : i32
    %c0_i32_1 = arith.constant 0 : i32
    return %c0_i32, %c0_i32_0 : i32, i32
  }
  func.func @transform_3(%arg0: i32) -> (i32, i32, i32) {
    %c0_i32 = arith.constant 0 : i32
    %c0_i32_0 = arith.constant 0 : i32
    %c0_i32_1 = arith.constant 0 : i32
    return %arg0, %c0_i32, %c0_i32_0 : i32, i32, i32
  }
}

</mosaic_0001>

<bundles_post_ra>
// kernel: tpu_custom_call.1
= control target key start
LH: loop header
LB: loop body
LE: loop exit
PB: predicated region body
PF: predicated region fallthrough
CT: control target
= control target key end

     0   :  { %8 = vsyncpa [#allocation3], 0  ;;  %s915_s0 = inlined_call_operand.hbm [shape: f32[2,8,32], index: 0, kind: input, shape index: {}]   ;;  %s916_s1 = inlined_call_operand.hbm [shape: f32[32,96], index: 1, kind: input, shape index: {}]   ;;  %s917_s2 = inlined_call_operand.hbm [shape: f32[32,32], index: 2, kind: input, shape index: {}]   ;;  %s918_s3 = inlined_call_operand.hbm [shape: f32[2,8,32], index: 3, kind: output, shape index: {}]  }
   0x1   :  { %9 = vsyncpa [#allocation6], 0 }
   0x2   :  { %10 = vsyncpa [#allocation4], 0  ;;  %s782_s12 = smov [#allocation5]   ;;  %s783_s14 = smov [#allocation2]  }
   0x3   :  { %s28_s13 = sshll.u32 %s782_s12, 4  ;;  %s16_s15 = sshll.u32 %s783_s14, 4  ;;  %s29_s13 = int_to_ptr.vmem [resolvable:$true] %s28_s13  ;;  %s812_s15 = int_to_ptr.vmem [resolvable:$true] %s16_s15 }
   0x4   :  { %s688_s18 = scalar_lea.hbm %s916_s1, 512 }
   0x5   :  { %p689_p0 = scmp.ne.s32.totalorder %s916_s1, %s688_s18  ;;  %p692_p1 = scmp.lt.u32.totalorder %s688_s18, %s916_s1 }
   0x7   :  { %p694_p2 = pnand %p692_p1, %p689_p0 }
   0x9   :  { %697 = shalt.err (!%p694_p2)
}
   0xa   :  { %s698_s23 = scalar_lea.vmem %s29_s13, 512  ;;  %p703_p4 = scmp.lt.s32.totalorder %s29_s13, %s29_s13 }
   0xb   :  { %p699_p3 = scmp.ne.s32.totalorder %s29_s13, %s698_s23  ;;  %p704_p5 = scmp.lt.s32.totalorder %s698_s23, %s698_s23 }
   0xd   :  { %p705_p6 = por %p704_p5, %p703_p4 }
   0xf   :  { %p706_p7 = pnand %p705_p6, %p699_p3 }
  0x11   :  { %709 = shalt.err (!%p706_p7)
}
  0x12   :  { %s784_s24 = smov 128   ;;  %s785_s25 = smov 8  }
  0x13   :  { %34 = dma.hbm_to_vmem [thread:$0]  %s916_s1, 512, %s29_s13, [#allocation6], %s784_s24, %s784_s24, %s785_s25  }
  0x14   :  { %s710_s30 = scalar_lea.hbm %s915_s0, 256 }
  0x15   :  { %p711_p8 = scmp.ne.s32.totalorder %s915_s0, %s710_s30  ;;  %p714_p9 = scmp.lt.u32.totalorder %s710_s30, %s915_s0 }
  0x17   :  { %p716_p10 = pnand %p714_p9, %p711_p8 }
  0x19   :  { %719 = shalt.err (!%p716_p10)
}
  0x1a   :  { %s720_s8 = scalar_lea.vmem %s812_s15, 256  ;;  %p725_p12 = scmp.lt.s32.totalorder %s812_s15, %s812_s15 }
  0x1b   :  { %p721_p11 = scmp.ne.s32.totalorder %s812_s15, %s720_s8  ;;  %p726_p13 = scmp.lt.s32.totalorder %s720_s8, %s720_s8 }
  0x1d   :  { %p727_p0 = por %p726_p13, %p725_p12 }
  0x1f   :  { %p728_p1 = pnand %p727_p0, %p721_p11 }
  0x21   :  { %731 = shalt.err (!%p728_p1)
}
  0x22   :  { %22 = dma.hbm_to_vmem [thread:$0]  %s915_s0, 256, %s812_s15, [#allocation3], %s784_s24, %s784_s24, %s785_s25  }
  0x23   :  { %s786_s10 = smov [#allocation7]   ;;  %s732_s14 = scalar_lea.hbm %s917_s2, 512 }
  0x24   :  { %s40_s11 = sshll.u32 %s786_s10, 4  ;;  %p733_p2 = scmp.ne.s32.totalorder %s917_s2, %s732_s14  ;;  %s41_s11 = int_to_ptr.vmem [resolvable:$true] %s40_s11 }
  0x25   :  { %p736_p3 = scmp.lt.u32.totalorder %s732_s14, %s917_s2 }
  0x27   :  { %p738_p4 = pnand %p736_p3, %p733_p2 }
  0x29   :  { %741 = shalt.err (!%p738_p4)
}
  0x2a   :  { %s742_s20 = scalar_lea.vmem %s41_s11, 512  ;;  %p747_p6 = scmp.lt.s32.totalorder %s41_s11, %s41_s11 }
  0x2b   :  { %p743_p5 = scmp.ne.s32.totalorder %s41_s11, %s742_s20  ;;  %p748_p7 = scmp.lt.s32.totalorder %s742_s20, %s742_s20 }
  0x2d   :  { %p749_p8 = por %p748_p7, %p747_p6 }
  0x2f   :  { %p750_p9 = pnand %p749_p8, %p743_p5 }
  0x31   :  { %753 = shalt.err (!%p750_p9)
}
  0x32   :  { %46 = dma.hbm_to_vmem [thread:$0]  %s917_s2, 512, %s41_s11, [#allocation6], %s784_s24, %s784_s24, %s785_s25  }
  0x33   :  { %776 = dma.done.wait [#allocation3], 256  }
  0x34   :  { %777 = vsyncadd [#allocation3], 4294967040 }
  0x35   :  { %778 = dma.done.wait [#allocation6], 1024  }
  0x36   :  { %779 = vsyncadd [#allocation6], 4294966272  ;;  %vm66_vm0 = vcmask 261120   ;;  %v58_v0 = vld [vmem:[#allocation5] sm:$0xff]  ;;  %v59_v1 = vld [vmem:[#allocation5 + $0x8] sm:$0xff]  ;;  %v787_v8 = vmov 0.0  }
  0x37   :  { %v60_v2 = vld [vmem:[#allocation5 + $0x10] sm:$0xff]  ;;  %v654_v3 = vpack.c.bf16 %v59_v1, %v58_v0  ;;  %v61_v4 = vld [vmem:[#allocation5 + $0x18] sm:$0xff]  ;;  %623 = vmatprep.subr.mxu1 %v787_v8  ;;  %vm788_vm1 = vmmov 0   ;;  %s789_s2 = smov 96   ;;  %vm304_vm2 = vcmask 64512   ;;  %s790_s21 = smov 64  }
  0x38   :  { %v864_v5 = vld [vmem:[#allocation2] sm:$0xff]  ;;  %v658_v6 = vpack.c.bf16 %v61_v4, %v60_v2  ;;  %v868_v7 = vld [vmem:[#allocation2 + $0x8] sm:$0xff]  ;;  %625 = vmatprep.mubr.msk.f32.mxu1 %vm788_vm1, %v787_v8  ;;  %v62_v32 = vld [vmem:[#allocation7] sm:$0xff]  ;;  %s791_s22 = smov [#allocation8]  }
  0x39   :  { %620 = vmatprep.mubr.msk.f32.mxu0 %vm66_vm0, %v864_v5  ;;  %655 = vmatprep.subr.bf16.mxu0 %v654_v3  ;;  %v63_v33 = vld [vmem:[#allocation7 + $0x8] sm:$0xff]  ;;  %v64_v42 = vld [vmem:[#allocation7 + $0x10] sm:$0xff]  ;;  %v65_v43 = vld [vmem:[#allocation7 + $0x18] sm:$0xff]  ;;  %s569_s23 = sshll.u32 %s791_s22, 4  ;;  %s570_s23 = int_to_ptr.vmem [resolvable:$true] %s569_s23 }
  0x3a   :  { %657 = vmatpush3.bf16.msra.mxu0 %v654_v3  ;;  %v662_v34 = vpack.c.bf16 %v63_v33, %v62_v32  ;;  %v666_v44 = vpack.c.bf16 %v65_v43, %v64_v42  ;;  %s754_s26 = scalar_lea.vmem %s570_s23, 256  ;;  %p759_p11 = scmp.lt.s32.totalorder %s570_s23, %s570_s23 }
  0x3b   :  { %659 = vmatprep.subr.bf16.mxu0 %v658_v6  ;;  %p755_p10 = scmp.ne.s32.totalorder %s570_s23, %s754_s26  ;;  %p760_p12 = scmp.lt.s32.totalorder %s754_s26, %s754_s26 }
  0x3d   :  { %p761_p13 = por %p760_p12, %p759_p11 }
  0x3e   :  { %661 = vmatpush3.bf16.msra.mxu0 %v658_v6 }
  0x3f   :  { %663 = vmatprep.subr.bf16.mxu0 %v662_v34  ;;  %p762_p0 = pnand %p761_p13, %p755_p10 }
  0x41   :  { %621 = vmatmul.mubr.msk.f32.vlgmr.msra.gmra.mrb[0].mxu0 %vm66_vm0, %v868_v7 }
  0x42   :  { %665 = vmatpush3.bf16.msra.mxu0 %v662_v34 }
  0x43   :  { %667 = vmatprep.subr.bf16.mxu0 %v666_v44 }
  0x46   :  { %669 = vmatpush3.bf16.msra.mxu0 %v666_v44 }
 0x114   :  { %v622_v9 = vpop.f32.mrb[0].mxu0 }
 0x115   :  { %v139_v10 = vpop.f32.mrb[1].mxu0 }
 0x116   :  { %149 = vrot.lane.b32.xlu0 %v139_v10, %s789_s2 }
 0x11a   :  { %226 = vrot.lane.b32.xlu0 %v622_v9, %s789_s2 }
 0x188   :  { %v150_v11 = vpop.permute.xlu0 %149 }
 0x189   :  { %624 = vmatpush3.xpose.msk.msra.mxu1 %vm66_vm0, %v150_v11 }
 0x18a   :  { %628 = vmatprep.subr.mxu1 %v787_v8 }
 0x18c   :  { %626 = vmatmul.mubr.msk.f32.vlgmr.msra.gmra.mrb[0].mxu1 %vm66_vm0, %v139_v10  ;;  %v227_v12 = vpop.permute.xlu0 %226 }
 0x18d   :  { %629 = vmatpush3.xpose.msk.msra.mxu1 %vm66_vm0, %v227_v12  ;;  %630 = vmatprep.mubr.msk.f32.mxu1 %vm788_vm1, %v787_v8 }
 0x18e   :  { %633 = vmatprep.subr.mxu1 %v787_v8 }
 0x190   :  { %631 = vmatmul.mubr.msk.f32.vlgmr.msra.gmra.mrb[2].mxu1 %vm66_vm0, %v622_v9 }
 0x191   :  { %635 = vmatprep.mubr.msk.f32.mxu1 %vm788_vm1, %v787_v8 }
 0x25f   :  { %v221_v13 = vpop.f32.mrb[0].mxu1 }
 0x260   :  { %v302_v14 = vmul.f32 0.17677669, %v221_v13  ;;  %v627_v15 = vpop.f32.mrb[1].mxu1 }
 0x262   :  { %v305_v16 = vsel %vm304_vm2, %v302_v14, -inf }
 0x263   :  { %306 = vmax.xlane.f32.xlu1 %v305_v16  ;;  %v298_v17 = vpop.f32.mrb[2].mxu1 }
 0x264   :  { %v303_v18 = vmul.f32 0.17677669, %v298_v17  ;;  %v632_v19 = vpop.f32.mrb[3].mxu1 }
 0x266   :  { %v308_v20 = vsel %vm304_vm2, %v303_v18, -inf }
 0x267   :  { %309 = vmax.xlane.f32.xlu1 %v308_v20 }
 0x278   :  { %327 = vrot.lane.b32.xlu1 %v139_v10, %s790_s21 }
 0x2f0   :  { %v307_v21 = vpop.xlane.xlu1 %306 }
 0x2f1   :  { %v311_v22 = vsub.f32 %v302_v14, %v307_v21 }
 0x2f3   :  { %v313_v23 = vmul.f32 1.442695, %v311_v22 }
 0x2f4   :  { %v310_v24 = vpop.xlane.xlu1 %309 }
 0x2f5   :  { %680 = vpow2.f32 %v313_v23  ;;  %v312_v25 = vsub.f32 %v303_v18, %v310_v24 }
 0x2f7   :  { %v315_v26 = vmul.f32 1.442695, %v312_v25 }
 0x2f8   :  { %v328_v27 = vpop.permute.xlu1 %327 }
 0x2f9   :  { %682 = vpow2.f32 %v315_v26  ;;  %634 = vmatpush3.msra.mxu1 %v328_v27 }
 0x2fa   :  { %638 = vmatprep.subr.mxu1 %v787_v8 }
 0x2ff   :  { %v681_v28 = vpop.eup %680 }
 0x300   :  { %v317_v29 = vsel %vm304_vm2, %v681_v28, 0.0 }
 0x301   :  { %318 = vadd.xlane.f32.xlu0 %v317_v29 }
 0x303   :  { %v683_v30 = vpop.eup %682 }
 0x304   :  { %v320_v31 = vsel %vm304_vm2, %v683_v30, 0.0 }
 0x305   :  { %321 = vadd.xlane.f32.xlu1 %v320_v31 }
 0x316   :  { %403 = vrot.lane.b32.xlu1 %v622_v9, %s790_s21 }
 0x38e   :  { %v319_v35 = vpop.xlane.xlu0 %318 }
 0x38f   :  { %684 = vrcp.f32 %v319_v35 }
 0x392   :  { %v322_v36 = vpop.xlane.xlu1 %321 }
 0x393   :  { %686 = vrcp.f32 %v322_v36 }
 0x396   :  { %v404_v39 = vpop.permute.xlu1 %403 }
 0x399   :  { %v685_v37 = vpop.eup %684 }
 0x39a   :  { %v325_v38 = vmul.f32 %v685_v37, %v681_v28 }
 0x39c   :  { %636 = vmatmul.mubr.msk.f32.vlgmr.msra.gmra.mrb[4].mxu1 %vm304_vm2, %v325_v38 }
 0x39d   :  { %v687_v40 = vpop.eup %686  ;;  %639 = vmatpush3.msra.mxu1 %v404_v39  ;;  %640 = vmatprep.mubr.msk.f32.mxu1 %vm788_vm1, %v787_v8 }
 0x39e   :  { %v326_v41 = vmul.f32 %v687_v40, %v683_v30 }
 0x3a0   :  { %641 = vmatmul.mubr.msk.f32.vlgmr.msra.gmra.mrb[6].mxu1 %vm304_vm2, %v326_v41 }
 0x46f   :  { %v399_v45 = vpop.f32.mrb[4].mxu1 }
 0x470   :  { %v637_v46 = vpop.f32.mrb[5].mxu1  ;;  %651 = vmatprep.mubr.msk.f32.mxu0 %vm66_vm0, %v399_v45 }
 0x473   :  { %v475_v47 = vpop.f32.mrb[6].mxu1 }
 0x474   :  { %v642_v48 = vpop.f32.mrb[7].mxu1  ;;  %652 = vmatmul.mubr.msk.f32.vlgmr.msra.gmra.mrb[2].mxu0 %vm66_vm0, %v475_v47 }
 0x547   :  { %v653_v49 = vpop.f32.mrb[2].mxu0 }
 0x548   :  { %v561_v50 = vadd.f32 %v653_v49, %v868_v7  ;;  %v551_v51 = vpop.f32.mrb[3].mxu0 }
 0x549   :  { %v560_v52 = vadd.f32 %v551_v51, %v864_v5 }
 0x54a   :  { %563 = vst.msk [vmem:[#allocation8 + $0x8] sm:$0xff] %vm66_vm0, %v561_v50 }
 0x54b   :  { %562 = vst.msk [vmem:[#allocation8] sm:$0xff] %vm66_vm0, %v560_v52 }
 0x54c   :  { %765 = shalt.err (!%p762_p0)
}
 0x54d   :  { %s766_s29 = scalar_lea.hbm %s918_s3, 256 }
 0x54e   :  { %p767_p1 = scmp.ne.s32.totalorder %s918_s3, %s766_s29  ;;  %p770_p2 = scmp.lt.u32.totalorder %s766_s29, %s918_s3 }
 0x550   :  { %p772_p3 = pnand %p770_p2, %p767_p1 }
 0x552   :  { %775 = shalt.err (!%p772_p3)
}
 0x553   :  { %575 = dma.vmem_to_hbm [thread:$0]  %s570_s23, 256, %s918_s3, [#allocation4], %s784_s24, %s784_s24, %s785_s25  }
 0x554   :  { %780 = dma.done.wait [#allocation4], 256  }
 0x555   :  { %781 = vsyncadd [#allocation4], 4294967040 }
 0x556   :  { %579 = vsyncpa [#allocation3], 1 }
 0x557   :  { %580 = vsyncpa [#allocation6], 1 }
 0x558   :  { %581 = vsyncpa [#allocation4], 1 }

</bundles_post_ra>
